<compile_context>
chip_gen: v7x
topology: tpu7x:2x2x1
jax: 0.10.0
libtpu: 0.0.40
codegen_flags: <defaults>
</compile_context>

<pallas_src>
import functools

import jax
import jax.numpy as jnp
from jax import lax
from jax.experimental import pallas as pl
from jax.experimental.pallas import tpu as pltpu


# ----------------------------------------------------------------------------
# Fused kernel: conv (+folded bias) as one MXU matmul, ReLU, training-mode BN.
# The big N*H*W axis is on lanes for every in-kernel tensor.
# ----------------------------------------------------------------------------
def fused_conv_relu_bn_kernel(inv_count, eps, n_batch, hw,
                              xcolT_ref,   # (Kp, M)    bf16 im2col patches (+ ones/zero rows), M = N*H*W
                              wT_ref,      # (Cout, Kp) bf16 conv weights (+ bias column, zero pad)
                              gb_ref,      # (Cout, 2)  f32: [:,0]=gamma, [:,1]=beta
                              o_ref):      # (N, Cout, H*W)
    # Convolution + bias as a single bf16 MXU matmul with f32 accumulation.
    acc = jnp.dot(wT_ref[...], xcolT_ref[...],
                  preferred_element_type=jnp.float32)            # (Cout, M) f32

    # ReLU (bias already added via the folded ones-row).
    acc = jnp.maximum(acc, 0.0)

    # BatchNorm2d, training mode: biased batch statistics over (N, H, W) -- the
    # lane axis here.  Two-pass (centered) variance, matching E[(x-mean)^2].
    mean = jnp.sum(acc, axis=1, keepdims=True) * inv_count        # (Cout, 1)
    centered = acc - mean
    var = jnp.sum(centered * centered, axis=1, keepdims=True) * inv_count
    scale = gb_ref[:, 0:1] * lax.rsqrt(var + eps)                 # (Cout, 1)
    shift = gb_ref[:, 1:2]                                        # (Cout, 1)
    y = centered * scale + shift                                  # (Cout, M)

    # Columns are grouped by batch index (m = n*H*W + h*W + w): write each
    # batch slab directly, so the output is already (N, Cout, H*W) and the
    # wrapper only needs a free reshape to NCHW.  H*W is a multiple of 128,
    # so every slice/store is lane-aligned and unmasked.
    for n in range(n_batch):
        o_ref[n, :, :] = y[:, n * hw:(n + 1) * hw].astype(o_ref.dtype)


# ----------------------------------------------------------------------------
# Wrapper: im2col + bias folding + parameter packing (layout plumbing in XLA),
# one un-gridded pallas_call, then a free reshape to NCHW.
# ----------------------------------------------------------------------------
def one_conv_forward(x_nchw, w_oihw, bias, gamma, beta, eps=1e-5):
    N, Cin, H, W = x_nchw.shape
    Cout, _, KH, KW = w_oihw.shape
    ph, pw = (KH - 1) // 2, (KW - 1) // 2            # FindPad(FilterSize)
    HW = H * W
    M = N * HW
    Kc = KH * KW * Cin
    Kp = ((Kc + 1 + 7) // 8) * 8                     # + bias row, pad to x8 sublanes

    x = x_nchw.astype(jnp.float32)
    xpad = jnp.pad(x, ((0, 0), (0, 0), (ph, ph), (pw, pw)))       # pad H, W

    # im2col, transposed:  xcolT[(kh*KW+kw)*Cin + ci, n*H*W + h*W + w]
    #                        = xpad[n, ci, h+kh, w+kw]
    taps = [xpad[:, :, kh:kh + H, kw:kw + W]
            for kh in range(KH) for kw in range(KW)]              # each (N,Cin,H,W)
    xcolT = (jnp.stack(taps, axis=0)                              # (T, N, Cin, H, W)
             .transpose(0, 2, 1, 3, 4)                            # (T, Cin, N, H, W)
             .reshape(Kc, M))
    # Fold the conv bias into the contraction: one ones-row (bias tap) plus
    # zero rows to reach Kp.
    xcolT = jnp.concatenate(
        [xcolT,
         jnp.ones((1, M), jnp.float32),
         jnp.zeros((Kp - Kc - 1, M), jnp.float32)], axis=0)       # (Kp, M)

    # Weights: OIHW -> (Cout, KH, KW, Cin) -> (Cout, Kc), matching xcolT's k
    # order, then append the bias column and zero padding.
    wT = (w_oihw.astype(jnp.float32)
          .transpose(0, 2, 3, 1)
          .reshape(Cout, Kc))
    wT = jnp.concatenate(
        [wT,
         bias.reshape(Cout, 1).astype(jnp.float32),
         jnp.zeros((Cout, Kp - Kc - 1), jnp.float32)], axis=1)    # (Cout, Kp)

    # Pack gamma/beta into one small array -> single DMA.
    gb = jnp.stack([gamma.astype(jnp.float32),
                    beta.astype(jnp.float32)], axis=1)            # (Cout, 2)

    out = pl.pallas_call(
        functools.partial(fused_conv_relu_bn_kernel,
                          1.0 / float(M), float(eps), N, HW),
        out_shape=jax.ShapeDtypeStruct((N, Cout, HW), jnp.float32),
        in_specs=[
            pl.BlockSpec(memory_space=pltpu.MemorySpace.VMEM),
            pl.BlockSpec(memory_space=pltpu.MemorySpace.VMEM),
            pl.BlockSpec(memory_space=pltpu.MemorySpace.VMEM),
        ],
        out_specs=pl.BlockSpec(memory_space=pltpu.MemorySpace.VMEM),
    )(xcolT.astype(jnp.bfloat16), wT.astype(jnp.bfloat16), gb)

    # (N, Cout, H*W) -> (N, Cout, H, W): pure reshape, no transpose, no extra
    # HBM pass.
    return out.reshape(N, Cout, H, W)


# ----------------------------------------------------------------------------
# Pure-JAX f32 reference (mirrors PyTorch conv -> ReLU -> training BatchNorm2d)
# ----------------------------------------------------------------------------
def reference(x_nchw, w_oihw, bias, gamma, beta, eps=1e-5):
    x = x_nchw.astype(jnp.float32)
    y = lax.conv_general_dilated(x, w_oihw.astype(jnp.float32),
                                 window_strides=(1, 1), padding="SAME",
                                 dimension_numbers=("NCHW", "OIHW", "NCHW"))
    y = y + bias.reshape(1, -1, 1, 1)
    y = jnp.maximum(y, 0.0)
    mean = jnp.mean(y, axis=(0, 2, 3), keepdims=True)
    var = jnp.mean((y - mean) ** 2, axis=(0, 2, 3), keepdims=True)
    return (gamma.reshape(1, -1, 1, 1) * (y - mean) / jnp.sqrt(var + eps)
            + beta.reshape(1, -1, 1, 1))


if __name__ == "__main__":
    # Small shapes consistent with the module: FilterIn=4, FilterNum=8,
    # FilterSize=3 (padding=1), batch=2, spatial=16x16.
    N, Cin, Cout, H, W, K = 2, 4, 8, 16, 16, 3

    key = jax.random.PRNGKey(0)
    kx, kw, kb, kg, kbt = jax.random.split(key, 5)
    x = jax.random.normal(kx, (N, Cin, H, W), jnp.float32)
    w = 0.1 * jax.random.normal(kw, (Cout, Cin, K, K), jnp.float32)     # OIHW
    b = 0.1 * jax.random.normal(kb, (Cout,), jnp.float32)
    gamma = 1.0 + 0.1 * jax.random.normal(kg, (Cout,), jnp.float32)
    beta = 0.1 * jax.random.normal(kbt, (Cout,), jnp.float32)

    out = one_conv_forward(x, w, b, gamma, beta)
    out = jax.block_until_ready(out)

    ref = reference(x, w, b, gamma, beta)
    assert out.shape == (N, Cout, H, W)
    # bf16 MXU operands (f32 accumulation): agreement vs. the f32 reference is
    # ~1e-2 after BN normalization, so the tolerance is relaxed accordingly.
    assert jnp.allclose(out, ref, atol=5e-2, rtol=5e-2), (
        float(jnp.max(jnp.abs(out - ref))))

    print("KERNEL_OK")
</pallas_src>

<mosaic_0001>
module attributes {stable_mosaic.version = 11 : i64} {
  func.func @fused_conv_relu_bn_kernel(%arg0: memref<40x512xbf16, #tpu.memory_space<vmem>>, %arg1: memref<8x40xbf16, #tpu.memory_space<vmem>>, %arg2: memref<8x2xf32, #tpu.memory_space<vmem>>, %arg3: memref<2x8x256xf32, #tpu.memory_space<vmem>>) attributes {dimension_semantics = [], scalar_prefetch = 0 : i64, scratch_operands = 0 : i64, tpu.core_type = #tpu.core_type<tc>} {
    %c0 = arith.constant 0 : index
    %c0_0 = arith.constant 0 : index
    %0 = vector.load %arg1[%c0, %c0_0] : memref<8x40xbf16, #tpu.memory_space<vmem>>, vector<8x40xbf16>
    %c0_1 = arith.constant 0 : index
    %c0_2 = arith.constant 0 : index
    %1 = vector.load %arg0[%c0_1, %c0_2] : memref<40x512xbf16, #tpu.memory_space<vmem>>, vector<40x512xbf16>
    %cst = arith.constant dense<0.000000e+00> : vector<8x512xf32>
    %2 = tpu.matmul %0, %1, %cst {dimension_numbers = #tpu.dot_dimension_numbers<[1], [0], [0], [1], [0, 0, 1, 1], [], []>} : vector<8x40xbf16>, vector<40x512xbf16>, vector<8x512xf32> -> vector<8x512xf32>
    %cst_3 = arith.constant 0.000000e+00 : f32
    %3 = vector.broadcast %cst_3 : f32 to vector<8x512xf32>
    %4 = arith.maximumf %2, %3 : vector<8x512xf32>
    %cst_4 = arith.constant dense<0.000000e+00> : vector<8xf32>
    %5 = vector.multi_reduction <add>, %4, %cst_4 [1] : vector<8x512xf32> to vector<8xf32>
    %6 = vector.shape_cast %5 : vector<8xf32> to vector<8x1xf32>
    %cst_5 = arith.constant 0.001953125 : f32
    %7 = vector.broadcast %cst_5 : f32 to vector<8x1xf32>
    %8 = arith.mulf %6, %7 : vector<8x1xf32>
    %9 = vector.broadcast %8 : vector<8x1xf32> to vector<8x512xf32>
    %10 = arith.subf %4, %9 : vector<8x512xf32>
    %11 = arith.mulf %10, %10 : vector<8x512xf32>
    %cst_6 = arith.constant dense<0.000000e+00> : vector<8xf32>
    %12 = vector.multi_reduction <add>, %11, %cst_6 [1] : vector<8x512xf32> to vector<8xf32>
    %13 = vector.shape_cast %12 : vector<8xf32> to vector<8x1xf32>
    %cst_7 = arith.constant 0.001953125 : f32
    %14 = vector.broadcast %cst_7 : f32 to vector<8x1xf32>
    %15 = arith.mulf %13, %14 : vector<8x1xf32>
    %c0_8 = arith.constant 0 : index
    %c0_9 = arith.constant 0 : index
    %16 = vector.load %arg2[%c0_8, %c0_9] : memref<8x2xf32, #tpu.memory_space<vmem>>, vector<8x1xf32>
    %cst_10 = arith.constant 9.99999974E-6 : f32
    %17 = vector.broadcast %cst_10 : f32 to vector<8x1xf32>
    %18 = arith.addf %15, %17 : vector<8x1xf32>
    %19 = math.rsqrt %18 : vector<8x1xf32>
    %20 = arith.mulf %16, %19 : vector<8x1xf32>
    %c0_11 = arith.constant 0 : index
    %c1 = arith.constant 1 : index
    %21 = vector.load %arg2[%c0_11, %c1] : memref<8x2xf32, #tpu.memory_space<vmem>>, vector<8x1xf32>
    %22 = vector.broadcast %20 : vector<8x1xf32> to vector<8x512xf32>
    %23 = arith.mulf %10, %22 : vector<8x512xf32>
    %24 = vector.broadcast %21 : vector<8x1xf32> to vector<8x512xf32>
    %25 = arith.addf %23, %24 : vector<8x512xf32>
    %26 = vector.extract_strided_slice %25 {offsets = [0, 0], sizes = [8, 256], strides = [1, 1]} : vector<8x512xf32> to vector<8x256xf32>
    %c0_12 = arith.constant 0 : index
    %c0_13 = arith.constant 0 : index
    %c0_14 = arith.constant 0 : index
    %27 = vector.load %arg3[%c0_12, %c0_13, %c0_14] : memref<2x8x256xf32, #tpu.memory_space<vmem>>, vector<1x8x256xf32>
    %28 = vector.shape_cast %27 : vector<1x8x256xf32> to vector<8x256xf32>
    %29 = vector.shape_cast %26 : vector<8x256xf32> to vector<1x8x256xf32>
    tpu.vector_store %arg3[%c0_12, %c0_13, %c0_14], %29 {strides = array<i32>} : memref<2x8x256xf32, #tpu.memory_space<vmem>>, vector<1x8x256xf32>,
    %30 = vector.extract_strided_slice %25 {offsets = [0, 256], sizes = [8, 256], strides = [1, 1]} : vector<8x512xf32> to vector<8x256xf32>
    %c1_15 = arith.constant 1 : index
    %c0_16 = arith.constant 0 : index
    %c0_17 = arith.constant 0 : index
    %31 = vector.load %arg3[%c1_15, %c0_16, %c0_17] : memref<2x8x256xf32, #tpu.memory_space<vmem>>, vector<1x8x256xf32>
    %32 = vector.shape_cast %31 : vector<1x8x256xf32> to vector<8x256xf32>
    %33 = vector.shape_cast %30 : vector<8x256xf32> to vector<1x8x256xf32>
    tpu.vector_store %arg3[%c1_15, %c0_16, %c0_17], %33 {strides = array<i32>} : memref<2x8x256xf32, #tpu.memory_space<vmem>>, vector<1x8x256xf32>,
    return
  }
}

</mosaic_0001>

<bundles_post_ra>
// kernel: tpu_custom_call.1
= control target key start
LH: loop header
LB: loop body
LE: loop exit
PB: predicated region body
PF: predicated region fallthrough
CT: control target
= control target key end

     0   :  { %8 = vsyncpa [#allocation3], 0  ;;  %s411_s0 = inlined_call_operand.hbm [shape: bf16[40,512], index: 0, kind: input, shape index: {}]   ;;  %s412_s1 = inlined_call_operand.vmem [shape: bf16[8,40], index: 1, kind: input, shape index: {}]   ;;  %s413_s2 = inlined_call_operand.vmem [shape: f32[8,2], index: 2, kind: input, shape index: {}]   ;;  %s414_s3 = inlined_call_operand.hbm [shape: f32[2,8,256], index: 3, kind: output, shape index: {}]  }
   0x1   :  { %9 = vsyncpa [#allocation4], 0  ;;  %s349_s12 = smov [#allocation2]   ;;  %s301_s16 = scalar_lea.hbm %s411_s0, 1280 }
   0x2   :  { %s15_s13 = sshll.u32 %s349_s12, 4  ;;  %p302_p0 = scmp.ne.s32.totalorder %s411_s0, %s301_s16  ;;  %s16_s13 = int_to_ptr.vmem [resolvable:$true] %s15_s13 }
   0x3   :  { %p305_p1 = scmp.lt.u32.totalorder %s301_s16, %s411_s0 }
   0x5   :  { %p307_p2 = pnand %p305_p1, %p302_p0 }
   0x7   :  { %310 = shalt.err (!%p307_p2)
}
   0x8   :  { %s311_s21 = scalar_lea.vmem %s16_s13, 1280  ;;  %p316_p4 = scmp.lt.s32.totalorder %s16_s13, %s16_s13 }
   0x9   :  { %p312_p3 = scmp.ne.s32.totalorder %s16_s13, %s311_s21  ;;  %p317_p5 = scmp.lt.s32.totalorder %s311_s21, %s311_s21 }
   0xb   :  { %p318_p6 = por %p317_p5, %p316_p4 }
   0xd   :  { %p319_p7 = pnand %p318_p6, %p312_p3 }
   0xf   :  { %322 = shalt.err (!%p319_p7)
}
  0x10   :  { %s350_s22 = smov 256   ;;  %s351_s23 = smov 16  }
  0x11   :  { %21 = dma.hbm_to_vmem [thread:$0]  %s411_s0, 1280, %s16_s13, [#allocation3], %s350_s22, %s350_s22, %s351_s23  }
  0x12   :  { %345 = dma.done.wait [#allocation3], 1280  }
  0x13   :  { %346 = vsyncadd [#allocation3], 4294966016  ;;  %v352_v0 = vmov 0   ;;  %v283_v1 = vld [vmem:[#allocation2 + $0x4] ss:$16 sps:$4 sm:$0xff]   ;;  %vm95_vm0 = vcmask 1043456  }
  0x14   :  { %140 = vmatprep.mubr.bf16.mxu0 %v352_v0  ;;  %181 = vmatprep.mubr.bf16.mxu1 %v352_v0  ;;  %v285_v2 = vld [vmem:[#allocation2 + $0xc] ss:$16 sps:$4 sm:$0xff]   ;;  %v287_v3 = vld [vmem:[#allocation2] ss:$16 sps:$4 sm:$0xff]   ;;  %v288_v4 = vld [vmem:[#allocation2 + $0x8] ss:$16 sps:$4 sm:$0xff]  }
  0x15   :  { %280 = vset.pattern.permute.xlu1 %v352_v0  ;;  %108 = vmatprep.subr.bf16.mxu0 %v283_v1  ;;  %v289_v5 = vld [vmem:[#allocation2 + $0x24] ss:$16 sps:$4 sm:$0xff]   ;;  %v291_v6 = vld [vmem:[#allocation2 + $0x2c] ss:$16 sps:$4 sm:$0xff]   ;;  %v293_v7 = vld [vmem:[#allocation2 + $0x20] ss:$16 sps:$4 sm:$0xff]  }
  0x16   :  { %149 = vmatprep.subr.bf16.mxu1 %v285_v2  ;;  %109 = vmatpush1.bf16.msra.mxu0 %v287_v3  ;;  %v294_v8 = vld [vmem:[#allocation2 + $0x28] ss:$16 sps:$4 sm:$0xff]   ;;  %v39_v9 = vld [vmem:[#allocation2 + $0x40] sm:$0xff]  ;;  %vm91_vm1 = vcmask 326656   ;;  %v353_v46 = vmov 1   ;;  %s354_s28 = smov [#allocation5]  }
  0x17   :  { %150 = vmatpush1.bf16.msra.mxu1 %v288_v4  ;;  %110 = vmatprep.subr.bf16.mxu0 %v289_v5  ;;  %v40_v10 = vld [vmem:[#allocation2 + $0x48] sm:$0xff]  ;;  %v267_v11 = vcombine.high %v39_v9, %v39_v9  ;;  %v266_v13 = vcombine.low %v39_v9, %v39_v9  ;;  %v30_v17 = vld [vmem:[%s412_s1] sm:$0xf]  ;;  %s246_s29 = sshll.u32 %s354_s28, 4  ;;  %s247_s29 = int_to_ptr.vmem [resolvable:$true] %s246_s29 }
  0x18   :  { %151 = vmatprep.subr.bf16.mxu1 %v291_v6  ;;  %v269_v12 = vcombine.high %v40_v10, %v40_v10  ;;  %v268_v14 = vcombine.low %v40_v10, %v40_v10  ;;  %282 = vset.pattern.permute.xlu0 %v353_v46  ;;  %v214_v50 = vld [vmem:[%s413_s2] sm:$0xff]  ;;  %s323_s2 = scalar_lea.vmem %s247_s29, 512  ;;  %p328_p9 = scmp.lt.s32.totalorder %s247_s29, %s247_s29 }
  0x19   :  { %v97_v15 = vsel %vm95_vm0, %v266_v13, 0  ;;  %p324_p8 = scmp.ne.s32.totalorder %s247_s29, %s323_s2  ;;  %p329_p10 = scmp.lt.s32.totalorder %s323_s2, %s323_s2 }
  0x1a   :  { %111 = vmatpush1.bf16.msra.mxu0 %v293_v7  ;;  %v103_v16 = vsel %vm95_vm0, %v268_v14, 0 }
  0x1b   :  { %152 = vmatpush1.bf16.msra.mxu1 %v294_v8  ;;  %270 = vmatprep.subr.msk.bf16.mxu0 %vm95_vm0, %v267_v11  ;;  %p330_p11 = por %p329_p10, %p328_p9 }
  0x1c   :  { %272 = vmatprep.subr.msk.bf16.mxu1 %vm95_vm0, %v269_v12 }
  0x1d   :  { %p331_p12 = pnand %p330_p11, %p324_p8 }
  0x1e   :  { %113 = vmatpush1.bf16.msra.mxu0 %v97_v15 }
  0x1f   :  { %154 = vmatpush1.bf16.msra.mxu1 %v103_v16 }
  0x21   :  { %271 = vmatmul.mubr.msk.bf16.vlgmr.msra.gmra.mrb[0].mxu0 %vm91_vm1, %v30_v17 }
  0x22   :  { %273 = vmatmul.mubr.msk.bf16.vlgmr.msra.gmra.mrb[0].mxu1 %vm91_vm1, %v30_v17 }
  0xf4   :  { %v142_v18 = vpop.f32.mrb[0].mxu0 }
  0xf5   :  { %v183_v19 = vpop.f32.mrb[0].mxu1  ;;  %v190_v20 = vmax.f32 %v142_v18, 0.0  ;;  %v144_v21 = vpop.f32.mrb[1].mxu0 }
  0xf6   :  { %v185_v22 = vpop.f32.mrb[1].mxu1  ;;  %v192_v23 = vmax.f32 %v183_v19, 0.0  ;;  %v191_v24 = vmax.f32 %v144_v21, 0.0  ;;  %v146_v25 = vpop.f32.mrb[2].mxu0 }
  0xf7   :  { %v187_v26 = vpop.f32.mrb[2].mxu1  ;;  %v147_v27 = vpop.f32.mrb[3].mxu0  ;;  %v193_v30 = vmax.f32 %v185_v22, 0.0 }
  0xf8   :  { %v188_v28 = vpop.f32.mrb[3].mxu1  ;;  %v194_v29 = vadd.f32 %v191_v24, %v190_v20 }
  0xfa   :  { %v195_v31 = vadd.f32 %v194_v29, %v192_v23 }
  0xfc   :  { %v196_v32 = vadd.f32 %v195_v31, %v193_v30 }
  0xfe   :  { %197 = vadd.xlane.f32.xlu0 %v196_v32 }
 0x18b   :  { %v198_v33 = vpop.xlane.xlu0 %197 }
 0x18c   :  { %v199_v34 = vmul.f32 0.001953125, %v198_v33 }
 0x18e   :  { %v200_v35 = vsub.f32 %v190_v20, %v199_v34  ;;  %v201_v36 = vsub.f32 %v191_v24, %v199_v34  ;;  %v202_v37 = vsub.f32 %v192_v23, %v199_v34  ;;  %v203_v38 = vsub.f32 %v193_v30, %v199_v34 }
 0x190   :  { %v204_v39 = vmul.f32 %v200_v35, %v200_v35  ;;  %v205_v40 = vmul.f32 %v201_v36, %v201_v36  ;;  %v206_v41 = vmul.f32 %v202_v37, %v202_v37  ;;  %v207_v43 = vmul.f32 %v203_v38, %v203_v38 }
 0x192   :  { %v208_v42 = vadd.f32 %v205_v40, %v204_v39 }
 0x194   :  { %v209_v44 = vadd.f32 %v208_v42, %v206_v41 }
 0x196   :  { %v210_v45 = vadd.f32 %v209_v44, %v207_v43 }
 0x198   :  { %211 = vadd.xlane.f32.xlu0 %v210_v45 }
 0x225   :  { %v212_v47 = vpop.xlane.xlu0 %211 }
 0x226   :  { %v213_v48 = vmul.f32 0.001953125, %v212_v47 }
 0x228   :  { %v215_v49 = vadd.f32 1e-05, %v213_v48 }
 0x22a   :  { %299 = vrsqrt.f32 %v215_v49 }
 0x234   :  { %v300_v51 = vpop.eup %299 }
 0x235   :  { %v217_v52 = vmul.f32 %v300_v51, %v214_v50 }
 0x237   :  { %220 = vperm.xlu1 %280, %v217_v52  }
 0x23b   :  { %281 = vset.pattern.permute.xlu1 %v353_v46 }
 0x23c   :  { %229 = vperm.xlu1 %281, %v214_v50  }
 0x2b6   :  { %v221_v53 = vpop.permute.xlu1 %220 }
 0x2b7   :  { %v223_v54 = vmul.f32 %v221_v53, %v200_v35  ;;  %v224_v55 = vmul.f32 %v221_v53, %v201_v36  ;;  %v225_v56 = vmul.f32 %v221_v53, %v202_v37  ;;  %v226_v57 = vmul.f32 %v221_v53, %v203_v38 }
 0x2bb   :  { %v230_v58 = vpop.permute.xlu1 %229 }
 0x2bc   :  { %v232_v59 = vadd.f32 %v230_v58, %v223_v54  ;;  %v233_v60 = vadd.f32 %v230_v58, %v224_v55  ;;  %v234_v61 = vadd.f32 %v230_v58, %v225_v56  ;;  %v235_v62 = vadd.f32 %v230_v58, %v226_v57 }
 0x2be   :  { %236 = vst [vmem:[#allocation5] sm:$0xff] %v232_v59  ;;  %237 = vst [vmem:[#allocation5 + $0x8] sm:$0xff] %v233_v60 }
 0x2bf   :  { %239 = vst [vmem:[#allocation5 + $0x10] sm:$0xff] %v234_v61  ;;  %240 = vst [vmem:[#allocation5 + $0x18] sm:$0xff] %v235_v62 }
 0x2c0   :  { %334 = shalt.err (!%p331_p12)
}
 0x2c1   :  { %s335_s5 = scalar_lea.hbm %s414_s3, 512 }
 0x2c2   :  { %p336_p13 = scmp.ne.s32.totalorder %s414_s3, %s335_s5  ;;  %p339_p0 = scmp.lt.u32.totalorder %s335_s5, %s414_s3 }
 0x2c4   :  { %p341_p1 = pnand %p339_p0, %p336_p13 }
 0x2c6   :  { %344 = shalt.err (!%p341_p1)
}
 0x2c7   :  { %252 = dma.vmem_to_hbm [thread:$0]  %s247_s29, 512, %s414_s3, [#allocation4], %s350_s22, %s350_s22, %s351_s23  }
 0x2c8   :  { %347 = dma.done.wait [#allocation4], 512  }
 0x2c9   :  { %348 = vsyncadd [#allocation4], 4294966784 }
 0x2ca   :  { %256 = vsyncpa [#allocation3], 1 }
 0x2cb   :  { %257 = vsyncpa [#allocation4], 1 }

</bundles_post_ra>
